<compile_context>
chip_gen: v7x
topology: tpu7x:2x2x1
jax: 0.10.0
libtpu: 0.0.40
codegen_flags: <defaults>
</compile_context>

<pallas_src>
import functools

import jax
import jax.numpy as jnp
from jax.experimental import pallas as pl
from jax.experimental.pallas import tpu as pltpu


# ----------------------------------------------------------------------------
# Pallas kernel: per-image cross-entropy sum + valid-pixel count.
# Grid: (N images [parallel], J pixel-row tiles [arbitrary/reduction]).
# ----------------------------------------------------------------------------
def _ce_kernel(x_ref, t_ref, out_ref, acc_loss, acc_cnt,
               *, num_classes, q_valid, tq):
    """One (image n, pixel-row tile j) step.

    x_ref  : (C, TQ, 128) logits tile (classes = leading untiled dim)
    t_ref  : (TQ, 128)    int32 label tile (pixels lane/sublane dense)
    out_ref: (2, 128)     per-image result slab (row 0 = loss sum, row 1 = count)
    acc_*  : (TQ, 128)    f32 per-pixel accumulators (VMEM scratch)
    """
    j = pl.program_id(1)
    j_last = pl.num_programs(1) - 1

    @pl.when(j == 0)
    def _init():
        acc_loss[...] = jnp.zeros_like(acc_loss)
        acc_cnt[...] = jnp.zeros_like(acc_cnt)

    t = t_ref[...]                                        # (TQ, 128) int32

    # Label validity (ignore_index-style: any out-of-range label is skipped).
    valid = jnp.logical_and(t >= 0, t < num_classes)      # (TQ, 128) bool
    # Ragged last tile: mask pixel rows past the true extent (no HBM pad).
    if (q_valid % tq) != 0:
        row = jax.lax.broadcasted_iota(jnp.int32, t.shape, 0) + j * tq
        valid = jnp.logical_and(valid, row < q_valid)

    # Pass 1: running max over the (small, static) class axis — pure VALU.
    m = x_ref[0].astype(jnp.float32)
    for c in range(1, num_classes):
        m = jnp.maximum(m, x_ref[c].astype(jnp.float32))

    # Pass 2: sum(exp(x - m)) and the target-class (x_t - m).
    # Static unrolled loop over classes: compare labels with a scalar class id
    # (no (C, P) iota materialization, no gather).
    sumexp = jnp.zeros_like(m)
    picked = jnp.zeros_like(m)
    for c in range(num_classes):
        d = x_ref[c].astype(jnp.float32) - m
        sumexp = sumexp + jnp.exp(d)                      # EUP
        picked = picked + jnp.where(t == c, d, 0.0)       # VALU cmp+sel+add

    loss = jnp.log(sumexp) - picked                       # per-pixel CE
    acc_loss[...] += jnp.where(valid, loss, 0.0)
    acc_cnt[...] += valid.astype(jnp.float32)

    @pl.when(j == j_last)
    def _finalize():
        total = jnp.sum(acc_loss[...])                    # one XLU reduce/image
        count = jnp.sum(acc_cnt[...])
        row0 = jax.lax.broadcasted_iota(jnp.int32, out_ref.shape, 0)
        out_ref[...] = jnp.where(row0 == 0, total, count)  # lane-dense store


def _pick_tq(num_classes, q_rows, itemsize, pipeline_vmem_budget):
    """Largest pixel-row tile TQ whose double-buffered pipeline footprint
    (logits + targets) plus the two f32 accumulators fits the VMEM budget."""
    per_row_bytes = 128 * (2 * (num_classes * itemsize + 4) + 2 * 4)
    tq = int(pipeline_vmem_budget // per_row_bytes)
    if tq >= q_rows:
        return q_rows                 # block == full dim (always legal)
    tq = max(8, (tq // 8) * 8)        # (8, 128) tiling constraint
    return q_rows if tq >= q_rows else tq


def _shard_cross_entropy(logits, targets, *,
                         pipeline_vmem_budget=40 * 1024 * 1024,
                         vmem_limit_bytes=48 * 1024 * 1024):
    """Mean cross-entropy over the valid pixels of ONE shard.

    logits : (N, C, H, W) float32 or bfloat16
    targets: (N, H, W)    integer labels; out-of-range labels are ignored
    returns: scalar f32 mean loss
    """
    N, C, H, W = logits.shape
    HW = H * W

    x = logits.reshape(N, C, HW)                    # free (contiguous merge)
    t = targets.astype(jnp.int32).reshape(N, HW)

    pad = (-HW) % 128
    if pad:
        # TODO(synk): rare fallback copy when H*W is not lane-aligned; padded
        # pixels carry label -1 and are excluded from sum and divisor.
        x = jnp.pad(x, ((0, 0), (0, 0), (0, pad)))
        t = jnp.pad(t, ((0, 0), (0, pad)), constant_values=-1)
    Q = (HW + pad) // 128

    x = x.reshape(N, C, Q, 128)                     # pixels as (sublane, lane)
    t = t.reshape(N, Q, 128)

    tq = _pick_tq(C, Q, jnp.dtype(x.dtype).itemsize, pipeline_vmem_budget)
    J = pl.cdiv(Q, tq)

    kernel = functools.partial(_ce_kernel, num_classes=C, q_valid=Q, tq=tq)

    out = pl.pallas_call(
        kernel,
        out_shape=jax.ShapeDtypeStruct((N, 2, 128), jnp.float32),
        grid=(N, J),
        in_specs=[
            # kernel sees (C, tq, 128): classes leading, pixels (8,128)-dense
            pl.BlockSpec((None, C, tq, 128), lambda n, j: (n, 0, j, 0)),
            # kernel sees (tq, 128) int32 labels
            pl.BlockSpec((None, tq, 128), lambda n, j: (n, j, 0)),
        ],
        # per-image (2, 128) slab: row 0 = loss sum, row 1 = valid count
        out_specs=pl.BlockSpec((None, 2, 128), lambda n, j: (n, 0, 0)),
        scratch_shapes=[
            pltpu.VMEM((tq, 128), jnp.float32),     # per-pixel loss accumulator
            pltpu.VMEM((tq, 128), jnp.float32),     # valid-pixel counter
        ],
        compiler_params=pltpu.CompilerParams(
            # N parallel -> both TensorCores on v7x stay busy even per shard;
            # J is the per-image reduction axis.
            dimension_semantics=("parallel", "arbitrary"),
            vmem_limit_bytes=vmem_limit_bytes,      # safe on v7x's 64 MiB VMEM
        ),
    )(x, t)

    sums = jnp.sum(out[:, 0, 0])
    cnts = jnp.sum(out[:, 1, 0])
    # NOTE: PyTorch returns NaN when every pixel is ignored; we return 0.
    return sums / jnp.maximum(cnts, 1.0)


# ----------------------------------------------------------------------------
# SelfDataParallel equivalent (wrapped module = segmentation criterion).
# ----------------------------------------------------------------------------
class SelfDataParallelPallas:
    """JAX/Pallas stand-in for SelfDataParallel wrapping a 2D cross-entropy
    criterion (reduction='mean', out-of-range labels ignored).

    __call__(inputs, targets):
      inputs : list of per-"device" NCHW logits shards (already scattered)
      targets: list of per-"device" NHW integer target shards
      returns: mean over shards of the per-shard mean cross-entropy
    """

    def __init__(self, device_ids=None, output_device=None, dim=0):
        # The wrapped criterion has no learnable parameters.
        self.device_ids = device_ids
        self.output_device = output_device
        self.dim = dim

    def __call__(self, inputs, targets):
        assert len(inputs) == len(targets)
        # TODO(synk): true replicate/parallel_apply across physical devices has
        # no single-kernel Pallas equivalent; each shard runs as one fused
        # pallas_call (grid (N, J)) and the per-shard scalars are averaged
        # ("gather + mean").  No jnp.stack of the full logits is performed.
        per_shard = [_shard_cross_entropy(x, t) for x, t in zip(inputs, targets)]
        return jnp.mean(jnp.stack(per_shard))


# ----------------------------------------------------------------------------
# Demo.
# ----------------------------------------------------------------------------
if __name__ == "__main__":
    key = jax.random.PRNGKey(0)
    n_shards = 2               # simulated device count
    N, C, H, W = 2, 4, 16, 16

    inputs, targets = [], []
    for _ in range(n_shards):
        key, k1, k2 = jax.random.split(key, 3)
        inputs.append(jax.random.normal(k1, (N, C, H, W), dtype=jnp.float32))
        targets.append(jax.random.randint(k2, (N, H, W), 0, C, dtype=jnp.int32))

    model = SelfDataParallelPallas(device_ids=list(range(n_shards)))
    loss = model(inputs, targets)
    loss = jax.block_until_ready(loss)

    # sanity check against a pure-JAX reference
    def ref_shard(logits, target):
        xx = jnp.transpose(logits, (0, 2, 3, 1)).reshape(-1, logits.shape[1])
        tt = target.reshape(-1)
        logp = jax.nn.log_softmax(xx, axis=-1)
        return -jnp.mean(jnp.take_along_axis(logp, tt[:, None], axis=-1))

    ref = jnp.mean(jnp.stack([ref_shard(x, t) for x, t in zip(inputs, targets)]))
    assert jnp.allclose(loss, ref, atol=1e-5, rtol=1e-5), (loss, ref)

    print("KERNEL_OK")
</pallas_src>

<mosaic_0001>
module attributes {stable_mosaic.version = 11 : i64} {
  func.func @_ce_kernel(%arg0: i32, %arg1: i32, %arg2: memref<1x4x2x128xf32, #tpu.memory_space<vmem>>, %arg3: memref<1x2x128xi32, #tpu.memory_space<vmem>>, %arg4: memref<1x2x128xf32, #tpu.memory_space<vmem>>, %arg5: memref<2x128xf32, #tpu.memory_space<vmem>>, %arg6: memref<2x128xf32, #tpu.memory_space<vmem>>) attributes {dimension_semantics = [#tpu.dimension_semantics<parallel>, #tpu.dimension_semantics<arbitrary>], iteration_bounds = array<i64: 2, 1>, scalar_prefetch = 0 : i64, scratch_operands = 2 : i64, tpu.core_type = #tpu.core_type<tc>, window_params = [{transform_indices = @transform_0, window_bounds = array<i64: 1, 4, 2, 128>}, {transform_indices = @transform_1, window_bounds = array<i64: 1, 2, 128>}, {transform_indices = @transform_2, window_bounds = array<i64: 1, 2, 128>}]} {
    %c0_i32 = arith.constant 0 : i32
    %0 = arith.cmpi eq, %arg1, %c0_i32 : i32
    %1 = arith.extui %0 : i1 to i32
    %c0_i32_0 = arith.constant 0 : i32
    %2 = arith.cmpi ne, %1, %c0_i32_0 : i32
    scf.if %2 {
      %cst_50 = arith.constant 0.000000e+00 : f32
      %78 = vector.broadcast %cst_50 : f32 to vector<2x128xf32>
      %c0_51 = arith.constant 0 : index
      %c0_52 = arith.constant 0 : index
      %79 = vector.load %arg5[%c0_51, %c0_52] : memref<2x128xf32, #tpu.memory_space<vmem>>, vector<2x128xf32>
      tpu.vector_store %arg5[%c0_51, %c0_52], %78 {strides = array<i32>} : memref<2x128xf32, #tpu.memory_space<vmem>>, vector<2x128xf32>,
      %cst_53 = arith.constant 0.000000e+00 : f32
      %80 = vector.broadcast %cst_53 : f32 to vector<2x128xf32>
      %c0_54 = arith.constant 0 : index
      %c0_55 = arith.constant 0 : index
      %81 = vector.load %arg6[%c0_54, %c0_55] : memref<2x128xf32, #tpu.memory_space<vmem>>, vector<2x128xf32>
      tpu.vector_store %arg6[%c0_54, %c0_55], %80 {strides = array<i32>} : memref<2x128xf32, #tpu.memory_space<vmem>>, vector<2x128xf32>,
    } else {
    }
    %c0 = arith.constant 0 : index
    %c0_1 = arith.constant 0 : index
    %c0_2 = arith.constant 0 : index
    %3 = vector.load %arg3[%c0, %c0_1, %c0_2] : memref<1x2x128xi32, #tpu.memory_space<vmem>>, vector<1x2x128xi32>
    %4 = vector.shape_cast %3 : vector<1x2x128xi32> to vector<2x128xi32>
    %c0_i32_3 = arith.constant 0 : i32
    %5 = vector.broadcast %c0_i32_3 : i32 to vector<2x128xi32>
    %6 = arith.cmpi sge, %4, %5 : vector<2x128xi32>
    %c4_i32 = arith.constant 4 : i32
    %7 = vector.broadcast %c4_i32 : i32 to vector<2x128xi32>
    %8 = arith.cmpi slt, %4, %7 : vector<2x128xi32>
    %9 = arith.andi %6, %8 : vector<2x128xi1>
    %c0_4 = arith.constant 0 : index
    %c0_5 = arith.constant 0 : index
    %c0_6 = arith.constant 0 : index
    %c0_7 = arith.constant 0 : index
    %10 = vector.load %arg2[%c0_4, %c0_5, %c0_6, %c0_7] : memref<1x4x2x128xf32, #tpu.memory_space<vmem>>, vector<1x1x2x128xf32>
    %11 = vector.shape_cast %10 : vector<1x1x2x128xf32> to vector<2x128xf32>
    %c0_8 = arith.constant 0 : index
    %c1 = arith.constant 1 : index
    %c0_9 = arith.constant 0 : index
    %c0_10 = arith.constant 0 : index
    %12 = vector.load %arg2[%c0_8, %c1, %c0_9, %c0_10] : memref<1x4x2x128xf32, #tpu.memory_space<vmem>>, vector<1x1x2x128xf32>
    %13 = vector.shape_cast %12 : vector<1x1x2x128xf32> to vector<2x128xf32>
    %14 = arith.maximumf %11, %13 : vector<2x128xf32>
    %c0_11 = arith.constant 0 : index
    %c2 = arith.constant 2 : index
    %c0_12 = arith.constant 0 : index
    %c0_13 = arith.constant 0 : index
    %15 = vector.load %arg2[%c0_11, %c2, %c0_12, %c0_13] : memref<1x4x2x128xf32, #tpu.memory_space<vmem>>, vector<1x1x2x128xf32>
    %16 = vector.shape_cast %15 : vector<1x1x2x128xf32> to vector<2x128xf32>
    %17 = arith.maximumf %14, %16 : vector<2x128xf32>
    %c0_14 = arith.constant 0 : index
    %c3 = arith.constant 3 : index
    %c0_15 = arith.constant 0 : index
    %c0_16 = arith.constant 0 : index
    %18 = vector.load %arg2[%c0_14, %c3, %c0_15, %c0_16] : memref<1x4x2x128xf32, #tpu.memory_space<vmem>>, vector<1x1x2x128xf32>
    %19 = vector.shape_cast %18 : vector<1x1x2x128xf32> to vector<2x128xf32>
    %20 = arith.maximumf %17, %19 : vector<2x128xf32>
    %cst = arith.constant 0.000000e+00 : f32
    %21 = vector.broadcast %cst : f32 to vector<2x128xf32>
    %cst_17 = arith.constant 0.000000e+00 : f32
    %22 = vector.broadcast %cst_17 : f32 to vector<2x128xf32>
    %c0_18 = arith.constant 0 : index
    %c0_19 = arith.constant 0 : index
    %c0_20 = arith.constant 0 : index
    %c0_21 = arith.constant 0 : index
    %23 = vector.load %arg2[%c0_18, %c0_19, %c0_20, %c0_21] : memref<1x4x2x128xf32, #tpu.memory_space<vmem>>, vector<1x1x2x128xf32>
    %24 = vector.shape_cast %23 : vector<1x1x2x128xf32> to vector<2x128xf32>
    %25 = arith.subf %24, %20 : vector<2x128xf32>
    %26 = math.exp %25 : vector<2x128xf32>
    %27 = arith.addf %21, %26 : vector<2x128xf32>
    %c0_i32_22 = arith.constant 0 : i32
    %28 = vector.broadcast %c0_i32_22 : i32 to vector<2x128xi32>
    %29 = arith.cmpi eq, %4, %28 : vector<2x128xi32>
    %cst_23 = arith.constant 0.000000e+00 : f32
    %30 = vector.broadcast %cst_23 : f32 to vector<2x128xf32>
    %31 = arith.select %29, %25, %30 : vector<2x128xi1>, vector<2x128xf32>
    %32 = arith.addf %22, %31 : vector<2x128xf32>
    %c0_24 = arith.constant 0 : index
    %c1_25 = arith.constant 1 : index
    %c0_26 = arith.constant 0 : index
    %c0_27 = arith.constant 0 : index
    %33 = vector.load %arg2[%c0_24, %c1_25, %c0_26, %c0_27] : memref<1x4x2x128xf32, #tpu.memory_space<vmem>>, vector<1x1x2x128xf32>
    %34 = vector.shape_cast %33 : vector<1x1x2x128xf32> to vector<2x128xf32>
    %35 = arith.subf %34, %20 : vector<2x128xf32>
    %36 = math.exp %35 : vector<2x128xf32>
    %37 = arith.addf %27, %36 : vector<2x128xf32>
    %c1_i32 = arith.constant 1 : i32
    %38 = vector.broadcast %c1_i32 : i32 to vector<2x128xi32>
    %39 = arith.cmpi eq, %4, %38 : vector<2x128xi32>
    %cst_28 = arith.constant 0.000000e+00 : f32
    %40 = vector.broadcast %cst_28 : f32 to vector<2x128xf32>
    %41 = arith.select %39, %35, %40 : vector<2x128xi1>, vector<2x128xf32>
    %42 = arith.addf %32, %41 : vector<2x128xf32>
    %c0_29 = arith.constant 0 : index
    %c2_30 = arith.constant 2 : index
    %c0_31 = arith.constant 0 : index
    %c0_32 = arith.constant 0 : index
    %43 = vector.load %arg2[%c0_29, %c2_30, %c0_31, %c0_32] : memref<1x4x2x128xf32, #tpu.memory_space<vmem>>, vector<1x1x2x128xf32>
    %44 = vector.shape_cast %43 : vector<1x1x2x128xf32> to vector<2x128xf32>
    %45 = arith.subf %44, %20 : vector<2x128xf32>
    %46 = math.exp %45 : vector<2x128xf32>
    %47 = arith.addf %37, %46 : vector<2x128xf32>
    %c2_i32 = arith.constant 2 : i32
    %48 = vector.broadcast %c2_i32 : i32 to vector<2x128xi32>
    %49 = arith.cmpi eq, %4, %48 : vector<2x128xi32>
    %cst_33 = arith.constant 0.000000e+00 : f32
    %50 = vector.broadcast %cst_33 : f32 to vector<2x128xf32>
    %51 = arith.select %49, %45, %50 : vector<2x128xi1>, vector<2x128xf32>
    %52 = arith.addf %42, %51 : vector<2x128xf32>
    %c0_34 = arith.constant 0 : index
    %c3_35 = arith.constant 3 : index
    %c0_36 = arith.constant 0 : index
    %c0_37 = arith.constant 0 : index
    %53 = vector.load %arg2[%c0_34, %c3_35, %c0_36, %c0_37] : memref<1x4x2x128xf32, #tpu.memory_space<vmem>>, vector<1x1x2x128xf32>
    %54 = vector.shape_cast %53 : vector<1x1x2x128xf32> to vector<2x128xf32>
    %55 = arith.subf %54, %20 : vector<2x128xf32>
    %56 = math.exp %55 : vector<2x128xf32>
    %57 = arith.addf %47, %56 : vector<2x128xf32>
    %c3_i32 = arith.constant 3 : i32
    %58 = vector.broadcast %c3_i32 : i32 to vector<2x128xi32>
    %59 = arith.cmpi eq, %4, %58 : vector<2x128xi32>
    %cst_38 = arith.constant 0.000000e+00 : f32
    %60 = vector.broadcast %cst_38 : f32 to vector<2x128xf32>
    %61 = arith.select %59, %55, %60 : vector<2x128xi1>, vector<2x128xf32>
    %62 = arith.addf %52, %61 : vector<2x128xf32>
    %63 = math.log %57 : vector<2x128xf32>
    %64 = arith.subf %63, %62 : vector<2x128xf32>
    %c0_39 = arith.constant 0 : index
    %c0_40 = arith.constant 0 : index
    %65 = vector.load %arg5[%c0_39, %c0_40] : memref<2x128xf32, #tpu.memory_space<vmem>>, vector<2x128xf32>
    %cst_41 = arith.constant 0.000000e+00 : f32
    %66 = vector.broadcast %cst_41 : f32 to vector<2x128xf32>
    %67 = arith.select %9, %64, %66 : vector<2x128xi1>, vector<2x128xf32>
    %68 = arith.addf %65, %67 : vector<2x128xf32>
    %c0_42 = arith.constant 0 : index
    %c0_43 = arith.constant 0 : index
    %69 = vector.load %arg5[%c0_42, %c0_43] : memref<2x128xf32, #tpu.memory_space<vmem>>, vector<2x128xf32>
    tpu.vector_store %arg5[%c0_42, %c0_43], %68 {strides = array<i32>} : memref<2x128xf32, #tpu.memory_space<vmem>>, vector<2x128xf32>,
    %c0_44 = arith.constant 0 : index
    %c0_45 = arith.constant 0 : index
    %70 = vector.load %arg6[%c0_44, %c0_45] : memref<2x128xf32, #tpu.memory_space<vmem>>, vector<2x128xf32>
    %71 = arith.extui %9 : vector<2x128xi1> to vector<2x128xi32>
    %72 = arith.sitofp %71 : vector<2x128xi32> to vector<2x128xf32>
    %73 = arith.addf %70, %72 : vector<2x128xf32>
    %c0_46 = arith.constant 0 : index
    %c0_47 = arith.constant 0 : index
    %74 = vector.load %arg6[%c0_46, %c0_47] : memref<2x128xf32, #tpu.memory_space<vmem>>, vector<2x128xf32>
    tpu.vector_store %arg6[%c0_46, %c0_47], %73 {strides = array<i32>} : memref<2x128xf32, #tpu.memory_space<vmem>>, vector<2x128xf32>,
    %c0_i32_48 = arith.constant 0 : i32
    %75 = arith.cmpi eq, %arg1, %c0_i32_48 : i32
    %76 = arith.extui %75 : i1 to i32
    %c0_i32_49 = arith.constant 0 : i32
    %77 = arith.cmpi ne, %76, %c0_i32_49 : i32
    scf.if %77 {
      %c0_50 = arith.constant 0 : index
      %c0_51 = arith.constant 0 : index
      %78 = vector.load %arg5[%c0_50, %c0_51] : memref<2x128xf32, #tpu.memory_space<vmem>>, vector<2x128xf32>
      %79 = vector.shape_cast %78 : vector<2x128xf32> to vector<1x2x128xf32>
      %cst_52 = arith.constant dense<0.000000e+00> : vector<1xf32>
      %80 = vector.multi_reduction <add>, %79, %cst_52 [1, 2] : vector<1x2x128xf32> to vector<1xf32>
      %81 = vector.shape_cast %80 : vector<1xf32> to vector<1x1x1xf32>
      %82 = vector.extract %81[0, 0, 0] : f32 from vector<1x1x1xf32>
      %c0_53 = arith.constant 0 : index
      %c0_54 = arith.constant 0 : index
      %83 = vector.load %arg6[%c0_53, %c0_54] : memref<2x128xf32, #tpu.memory_space<vmem>>, vector<2x128xf32>
      %84 = vector.shape_cast %83 : vector<2x128xf32> to vector<1x2x128xf32>
      %cst_55 = arith.constant dense<0.000000e+00> : vector<1xf32>
      %85 = vector.multi_reduction <add>, %84, %cst_55 [1, 2] : vector<1x2x128xf32> to vector<1xf32>
      %86 = vector.shape_cast %85 : vector<1xf32> to vector<1x1x1xf32>
      %87 = vector.extract %86[0, 0, 0] : f32 from vector<1x1x1xf32>
      %88 = tpu.iota {dimensions = array<i32: 0>} : vector<2x128xi32>
      %c0_i32_56 = arith.constant 0 : i32
      %89 = vector.broadcast %c0_i32_56 : i32 to vector<2x128xi32>
      %90 = arith.cmpi eq, %88, %89 : vector<2x128xi32>
      %91 = vector.broadcast %82 : f32 to vector<2x128xf32>
      %92 = vector.broadcast %87 : f32 to vector<2x128xf32>
      %93 = arith.select %90, %91, %92 : vector<2x128xi1>, vector<2x128xf32>
      %c0_57 = arith.constant 0 : index
      %c0_58 = arith.constant 0 : index
      %c0_59 = arith.constant 0 : index
      %94 = vector.load %arg4[%c0_57, %c0_58, %c0_59] : memref<1x2x128xf32, #tpu.memory_space<vmem>>, vector<1x2x128xf32>
      %95 = vector.shape_cast %94 : vector<1x2x128xf32> to vector<2x128xf32>
      %96 = vector.shape_cast %93 : vector<2x128xf32> to vector<1x2x128xf32>
      tpu.vector_store %arg4[%c0_57, %c0_58, %c0_59], %96 {strides = array<i32>} : memref<1x2x128xf32, #tpu.memory_space<vmem>>, vector<1x2x128xf32>,
    } else {
    }
    return
  }
  func.func @transform_0(%arg0: i32, %arg1: i32) -> (i32, i32, i32, i32) {
    %c0_i32 = arith.constant 0 : i32
    %c0_i32_0 = arith.constant 0 : i32
    %c0_i32_1 = arith.constant 0 : i32
    return %arg0, %c0_i32, %arg1, %c0_i32_0 : i32, i32, i32, i32
  }
  func.func @transform_1(%arg0: i32, %arg1: i32) -> (i32, i32, i32) {
    %c0_i32 = arith.constant 0 : i32
    %c0_i32_0 = arith.constant 0 : i32
    return %arg0, %arg1, %c0_i32 : i32, i32, i32
  }
  func.func @transform_2(%arg0: i32, %arg1: i32) -> (i32, i32, i32) {
    %c0_i32 = arith.constant 0 : i32
    %c0_i32_0 = arith.constant 0 : i32
    %c0_i32_1 = arith.constant 0 : i32
    return %arg0, %c0_i32, %c0_i32_0 : i32, i32, i32
  }
}

</mosaic_0001>

<bundles_post_ra>
// kernel: tpu_custom_call.1
= control target key start
LH: loop header
LB: loop body
LE: loop exit
PB: predicated region body
PF: predicated region fallthrough
CT: control target
= control target key end

     0   :  { %7 = vsyncpa [#allocation5], 0  ;;  %s930_s0 = inlined_call_operand.hbm [shape: f32[2,4,2,128], index: 0, kind: input, shape index: {}]   ;;  %s931_s1 = inlined_call_operand.hbm [shape: s32[2,2,128], index: 1, kind: input, shape index: {}]   ;;  %s932_s2 = inlined_call_operand.hbm [shape: f32[2,2,128], index: 2, kind: output, shape index: {}]  }
   0x1   :  { %9 = vsyncpa [#allocation5 + $0x1], 0 }
   0x2   :  { %10 = vsyncpa [#allocation8], 0 }
   0x3   :  { %12 = vsyncpa [#allocation8 + $0x1], 0 }
   0x4   :  { %13 = vsyncpa [#allocation6], 0 }
   0x5   :  { %15 = vsyncpa [#allocation6 + $0x1], 0  ;;  %s703_s9 = smov 0   ;;  %s705_s10 = smov 0  }
   0x6   :  { %s707_s11 = smov 0   ;;  %s709_s12 = smov 0  }
   0x7   :  { %s711_s13 = smov 0   ;;  %s713_s14 = smov 0  }
   0x8 LB: > { %s428_s15 = sadd.s32 4294967295, %s680_s14   ;;  %s429_s16 = sadd.s32 4294967294, %s680_s14   ;;  %s680_s14 = sphi %s713_s14, %s21_s14   ;;  %s676_s13 = sphi %s711_s13, %s953_s13   ;;  %s672_s12 = sphi %s709_s12, %s952_s12   ;;  %s668_s11 = sphi %s707_s11, %s951_s11   ;;  %s664_s10 = sphi %s705_s10, %s950_s10   ;;  %s660_s9 = sphi %s703_s9, %s949_s9  }
   0x9   : > { %s33_s17 = sadd.s32 1, %s676_s13  ;;  %s42_s18 = sadd.s32 1, %s668_s11 }
   0xa   : > { %p35_p0 = scmp.ge.s32.totalorder %s33_s17, 2  ;;  %p49_p1 = scmp.ne.s32.totalorder %s668_s11, %s664_s10 }
   0xb   : > { %p50_p2 = scmp.eq.s32.totalorder %s680_s14, 0  ;;  %p55_p3 = scmp.ne.s32.totalorder %s664_s10, %s660_s9 }
   0xc   : > { %s955_s17 = smov (%p35_p0, %s33_s17), 0  ;;  %p56_p5 = scmp.eq.s32.totalorder %s428_s15, 0 }
   0xd   : > { %p744_p4 = por %p50_p2, %p49_p1  ;;  %s37_s20 = ssub.s32 %s676_s13, %s955_s17 }
   0xe   : > { %p107_p6 = scmp.eq.s32.totalorder %s428_s15, 1  ;;  %p40_p7 = scmp.eq.s32.totalorder %s37_s20, 0 }
   0xf   : > { %p750_p8 = por %p56_p5, %p55_p3  ;;  %p113_p10 = scmp.eq.s32.totalorder %s429_s16, 1 }
  0x10   : > { %p754_p9 = por %p107_p6, %p49_p1  ;;  %p471_p13 = scmp.lt.s32.totalorder %s680_s14, 2 }
  0x11   : > { %s936_s21 = scalar_select %p750_p8, 1, 0 }
  0x12   : > { %s937_s22 = scalar_select %p754_p9, 1, 0 }
  0x13   : > { %s759_s23 = scalar_select %p40_p7, %s668_s11, %s42_s18  }
  0x14   : > { %p761_p11 = por %p113_p10, %p55_p3  ;;  %s768_s25 = sand.u32 1, %s668_s11  }
  0x15   : > { %s432_s26 = sshll.u32 %s768_s25, 3  ;;  %s449_s27 = sshll.u32 %s676_s13, 7 }
  0x16   : > { %s938_s24 = scalar_select %p761_p11, 1, 0 }
  0x17   : > { %s775_s30 = scalar_lea.hbm %s930_s0, %s449_s27  ;;  %s137_s3 = scalar_lea.vmem [#allocation4], %s432_s26 }
  0x18   : > { %s145_s4 = sshll.u32 %s137_s3, 4  ;;  %p781_p0 = pnand %p471_p13, %p744_p4  ;;  %s777_s4 = int_to_ptr.vmem [resolvable:$true] %s145_s4 }
  0x19   : > { %s134_s6 = scalar_lea.sflag [#allocation5], %s768_s25  ;;  %s534_s7 = scalar_lea.hbm %s775_s30, 128 }
  0x1a   : > { %p535_p2 = scmp.ne.s32.totalorder %s775_s30, %s534_s7  ;;  %p536_p3 = pneg %p781_p0 }
  0x1b   : > { %s539_s16 = scalar_lea.hbm %s930_s0, 256  ;;  %p540_p4 = scmp.lt.u32.totalorder %s775_s30, %s930_s0 }
  0x1c   : > { %p537_p5 = pnand %p536_p3, %p535_p2  ;;  %p541_p7 = scmp.lt.u32.totalorder %s539_s16, %s534_s7 }
  0x1d   : > { %p543_p13 = scmp.lt.u32.totalorder %s534_s7, %s775_s30 }
  0x1e   : > { %p538_p6 = pneg %p537_p5  ;;  %p542_p10 = por %p541_p7, %p540_p4 }
  0x20   : > { %p544_p12 = por %p543_p13, %p542_p10 }
  0x22   : > { %p545_p1 = pnand %p544_p12, %p538_p6 }
  0x24   : > { %548 = shalt.err (!%p545_p1)
}
  0x25   : > { %s549_s20 = scalar_lea.vmem %s777_s4, 128  ;;  %s682_s26 = smov [#allocation4]  }
  0x26   : > { %p550_p2 = scmp.ne.s32.totalorder %s777_s4, %s549_s20  ;;  %s554_s27 = sshll.u32 %s682_s26, 4  ;;  %s555_s27 = int_to_ptr.vmem [resolvable:$false] %s554_s27 }
  0x27   : > { %s556_s28 = scalar_lea.vmem %s555_s27, 256  ;;  %p557_p9 = scmp.lt.s32.totalorder %s777_s4, %s555_s27 }
  0x28   : > { %p552_p5 = pnand %p550_p2, %p536_p3  ;;  %p558_p4 = scmp.lt.s32.totalorder %s556_s28, %s549_s20 }
  0x2a   : > { %p553_p11 = pneg %p552_p5  ;;  %p559_p7 = por %p558_p4, %p557_p9 }
  0x2c   : > { %p560_p10 = pnand %p559_p7, %p553_p11 }
  0x2e   : > { %563 = shalt.err (!%p560_p10)
}
  0x2f   : > { %s683_s29 = smov 32   ;;  %s684_s3 = smov 2  }
  0x30   : > { %463 = dma.hbm_to_vmem [thread:$0]  (!%p781_p0), %s775_s30, 128, %s777_s4, %s134_s6, %s683_s29, %s683_s29, %s684_s3  }
  0x31   : > { %p172_p12 = scmp.lt.s32.totalorder %s680_s14, 3  ;;  %s435_s7 = sshll.u32 %s768_s25, 1 }
  0x32   : > { %s436_s8 = sshll.u32 %s676_s13, 5  ;;  %p940_p9 = scmp.ge.s32.totalorder %s680_s14, 1 }
  0x33   : > { %s826_s19 = scalar_lea.hbm %s931_s1, %s436_s8  ;;  %s159_s20 = scalar_lea.vmem [#allocation7], %s435_s7 }
  0x34   : > { %p819_p11 = pnand %p940_p9, %p172_p12  ;;  %s167_s26 = sshll.u32 %s159_s20, 4  ;;  %s168_s26 = int_to_ptr.vmem [resolvable:$true] %s167_s26 }
  0x35   : > { %s156_s30 = scalar_lea.sflag [#allocation8], %s768_s25  ;;  %s564_s4 = scalar_lea.hbm %s826_s19, 32 }
  0x36   : > { %s941_s15 = scalar_select %p819_p11, 1, 0 }
  0x37   : > { %p565_p1 = scmp.ne.s32.totalorder %s826_s19, %s564_s4  ;;  %s569_s28 = scalar_lea.hbm %s931_s1, 64 }
  0x38   : > { %p570_p2 = scmp.lt.u32.totalorder %s826_s19, %s931_s1  ;;  %p571_p5 = scmp.lt.u32.totalorder %s569_s28, %s564_s4 }
  0x39   : > { %p567_p6 = pnand %p565_p1, %p536_p3  ;;  %p573_p7 = scmp.lt.u32.totalorder %s564_s4, %s826_s19 }
  0x3a   : > { %p572_p4 = por %p571_p5, %p570_p2 }
  0x3b   : > { %p568_p13 = pneg %p567_p6 }
  0x3c   : > { %p574_p10 = por %p573_p7, %p572_p4 }
  0x3e   : > { %p575_p12 = pnand %p574_p10, %p568_p13 }
  0x40   : > { %578 = shalt.err (!%p575_p12)
}
  0x41   : > { %s579_s25 = scalar_lea.vmem %s168_s26, 32  ;;  %s685_s7 = smov [#allocation7]  }
  0x42   : > { %p580_p9 = scmp.ne.s32.totalorder %s168_s26, %s579_s25  ;;  %s584_s8 = sshll.u32 %s685_s7, 4  ;;  %s585_s8 = int_to_ptr.vmem [resolvable:$false] %s584_s8 }
  0x43   : > { %s586_s16 = scalar_lea.vmem %s585_s8, 64  ;;  %p587_p8 = scmp.lt.s32.totalorder %s168_s26, %s585_s8 }
  0x44   : > { %p582_p1 = pnand %p580_p9, %p536_p3  ;;  %p588_p11 = scmp.lt.s32.totalorder %s586_s16, %s579_s25 }
  0x46   : > { %p583_p6 = pneg %p582_p1  ;;  %p589_p2 = por %p588_p11, %p587_p8 }
  0x48   : > { %p590_p5 = pnand %p589_p2, %p583_p6 }
  0x4a   : > { %593 = shalt.err (!%p590_p5)
}
  0x4b   : > { %466 = dma.hbm_to_vmem [thread:$0]  (!%p781_p0), %s826_s19, 32, %s168_s26, %s156_s30  }
  0x4c   : > { %p942_p13 = scmp.ne.s32.totalorder %s941_s15, 0 }
  0x4d   : > { %s851_s18 = sand.u32 (!%p942_p13), 1, %s664_s10   ;;  %p943_p3 = scmp.ne.s32.totalorder (!%p942_p13), %s936_s21, 0 }
  0x4e   : > { %176 = sbr.rel (%p942_p13) target bundleno = 370 (0x172), region = 28  ;;  %s438_s20 = sshll.u32 (!%p942_p13), %s851_s18, 3 }
  0x4f   : > { %s179_s4 = scalar_lea.sflag (!%p942_p13), [#allocation5], %s851_s18  ;;  %s182_s6 = scalar_lea.vmem (!%p942_p13), [#allocation4], %s438_s20 }
  0x55   : > { %647 = dma.done.wait (%p943_p3), %s179_s4, 128  }
  0x56   : > { %649 = vsyncadd (%p943_p3), %s179_s4, 4294967168  ;;  %s439_s5 = sshll.u32 %s851_s18, 1  ;;  %s188_s15 = scalar_lea.sflag [#allocation8], %s851_s18 }
  0x57   : > { %s191_s19 = scalar_lea.vmem [#allocation7], %s439_s5 }
  0x58   : > { %651 = dma.done.wait (%p943_p3), %s188_s15, 32  }
  0x59   : > { %653 = vsyncadd (%p943_p3), %s188_s15, 4294967264  ;;  %v686_v0 = vmov 0.0   ;;  %v223_v1 = vld [vmem:[%s191_s19] sm:$0x3]  ;;  %v227_v2 = vld [vmem:[%s182_s6] sm:$0x3]  ;;  %v303_v59 = vlaneseq }
  0x5a   : > { %221 = vst [vmem:[#allocation2] sm:$0x3] %v686_v0  ;;  %222 = vst [vmem:[#allocation3] sm:$0x3] %v686_v0  ;;  %v441_v3 = vld [vmem:[%s182_s6 + $0x2] sm:$0x3] }
  0x5b   : > { %vm224_vm0 = vcmp.ge.s32.totalorder %v223_v1, 0  ;;  %vm225_vm1 = vcmp.lt.s32.totalorder %v223_v1, 4  ;;  %v230_v4 = vmax.f32 %v227_v2, %v441_v3  ;;  %v442_v5 = vld [vmem:[%s182_s6 + $0x4] sm:$0x3]  ;;  %v443_v7 = vld [vmem:[%s182_s6 + $0x6] sm:$0x3] }
  0x5c   : > { %vm867_vm2 = vmand %vm224_vm0, %vm225_vm1  ;;  %vm241_vm3 = vcmp.eq.s32.totalorder %v223_v1, 0  ;;  %vm248_vm4 = vcmp.eq.s32.totalorder %v223_v1, 1  ;;  %vm255_vm5 = vcmp.eq.s32.totalorder %v223_v1, 2  ;;  %vm262_vm6 = vcmp.eq.s32.totalorder %v223_v1, 3  ;;  %s446_s21 = sshll.u32 %s672_s12, 5  ;;  %s216_s30 = scalar_lea.vmem [#allocation9], %s439_s5 }
  0x5d   : > { %v233_v8 = vmax.f32 %v230_v4, %v442_v5  ;;  %v444_v10 = vsel %vm867_vm2, 1.0, %v686_v0  ;;  %vm281_vm7 = vcmask 1041408   ;;  %v304_v60 = vshrl.u32 %v303_v59, 7  ;;  %s324_s27 = sshll.u32 %s216_s30, 4  ;;  %s881_s25 = scalar_lea.hbm %s932_s2, %s446_s21  ;;  %s883_s27 = int_to_ptr.vmem [resolvable:$true] %s324_s27 }
  0x5e   : > { %s311_s12 = scalar_lea.sflag [#allocation6], %s851_s18  ;;  %s594_s7 = scalar_lea.vmem %s883_s27, 32 }
  0x5f   : > { %v236_v12 = vmax.f32 %v233_v8, %v443_v7  ;;  %vm305_vm8 = vcmp.eq.s32.totalorder %v304_v60, 0  ;;  %p595_p8 = scmp.ne.s32.totalorder %s883_s27, %s594_s7  ;;  %p946_p0 = scmp.ne.s32.totalorder %s937_s22, 0 }
  0x60   : > { %s687_s8 = smov [#allocation9]  }
  0x61   : > { %v272_v9 = vld [vmem:[#allocation3] sm:$0x3]  ;;  %v237_v13 = vsub.f32 %v227_v2, %v236_v12  ;;  %v244_v14 = vsub.f32 %v441_v3, %v236_v12  ;;  %v251_v15 = vsub.f32 %v442_v5, %v236_v12  ;;  %v258_v16 = vsub.f32 %v443_v7, %v236_v12  ;;  %v268_v38 = vld [vmem:[#allocation2] sm:$0x3]  ;;  %p596_p11 = pnand %p595_p8, %p946_p0  ;;  %s598_s16 = sshll.u32 %s687_s8, 4  ;;  %s599_s16 = int_to_ptr.vmem [resolvable:$false] %s598_s16 }
  0x62   : > { %v275_v11 = vadd.f32 %v444_v10, %v272_v9  ;;  %s600_s20 = scalar_lea.vmem %s599_s16, 64  ;;  %p601_p7 = scmp.lt.s32.totalorder %s883_s27, %s599_s16 }
  0x63   : > { %v238_v17 = vmul.f32 1.442695, %v237_v13  ;;  %v245_v18 = vmul.f32 1.442695, %v244_v14  ;;  %v252_v19 = vmul.f32 1.442695, %v251_v15  ;;  %p597_p4 = pneg %p596_p11  ;;  %p602_p10 = scmp.lt.s32.totalorder %s600_s20, %s594_s7 }
  0x64   : > { %276 = vst [vmem:[#allocation3] sm:$0x3] %v275_v11  ;;  %v259_v20 = vmul.f32 1.442695, %v258_v16  ;;  %v242_v27 = vsel %vm241_vm3, %v237_v13, 0.0  ;;  %v249_v28 = vsel %vm248_vm4, %v244_v14, 0.0 }
  0x65   : > { %524 = vpow2.f32 %v238_v17  ;;  %v250_v30 = vadd.f32 %v249_v28, %v242_v27  ;;  %v256_v31 = vsel %vm255_vm5, %v251_v15, 0.0  ;;  %v263_v33 = vsel %vm262_vm6, %v258_v16, 0.0  ;;  %p603_p12 = por %p602_p10, %p601_p7 }
  0x66   : > { %526 = vpow2.f32 %v245_v18 }
  0x67   : > { %528 = vpow2.f32 %v252_v19  ;;  %v257_v32 = vadd.f32 %v256_v31, %v250_v30  ;;  %p604_p9 = pnand %p603_p12, %p597_p4 }
  0x68   : > { %530 = vpow2.f32 %v259_v20 }
  0x69   : > { %v264_v34 = vadd.f32 %v263_v33, %v257_v32 }
  0x6b   : > { %v292_v42 = vld [vmem:[#allocation3] sm:$0x3] }
  0x6c   : > { %v293_v44 = vsel %vm281_vm7, %v292_v42, 0.0 }
  0x6f   : > { %v525_v21 = vpop.eup %524 }
  0x70   : > { %v527_v22 = vpop.eup %526 }
  0x71   : > { %v529_v23 = vpop.eup %528  ;;  %v247_v24 = vadd.f32 %v527_v22, %v525_v21 }
  0x72   : > { %v531_v25 = vpop.eup %530 }
  0x73   : > { %v254_v26 = vadd.f32 %v529_v23, %v247_v24 }
  0x75   : > { %v261_v29 = vadd.f32 %v531_v25, %v254_v26 }
  0x77   : > { %532 = vlog2.f32 %v261_v29 }
  0x81   : > { %v533_v35 = vpop.eup %532 }
  0x82   : > { %v266_v36 = vmul.f32 0.6931472, %v533_v35 }
  0x84   : > { %v267_v37 = vsub.f32 %v266_v36, %v264_v34 }
  0x86   : > { %v269_v39 = vsel %vm867_vm2, %v267_v37, 0.0 }
  0x87   : > { %v270_v40 = vadd.f32 %v269_v39, %v268_v38 }
  0x89   : > { %271 = vst [vmem:[#allocation2] sm:$0x3] %v270_v40 }
  0x90   : > { %v280_v41 = vld [vmem:[#allocation2] sm:$0x3] }
  0x91   : > { %v282_v43 = vsel %vm281_vm7, %v280_v41, 0.0 }
  0x92   : > { %283 = vadd.xlane.f32.xlu0 %v282_v43 }
  0x96   : > { %294 = vadd.xlane.f32.xlu0 %v293_v44 }
 0x11f   : > { %v284_v45 = vpop.xlane.xlu0 %283 }
 0x120   : > { %v285_v46 = vrot.slane %v284_v45, 4 }
 0x122   : > { %v286_v47 = vadd.f32 %v285_v46, %v284_v45 }
 0x123   : > { %v295_v48 = vpop.xlane.xlu0 %294 }
 0x124   : > { %v287_v49 = vrot.slane %v286_v47, 2  ;;  %v296_v50 = vrot.slane %v295_v48, 4 }
 0x126   : > { %v297_v51 = vadd.f32 %v296_v50, %v295_v48  ;;  %v288_v52 = vadd.f32 %v287_v49, %v286_v47 }
 0x128   : > { %v298_v53 = vrot.slane %v297_v51, 2  ;;  %v289_v54 = vrot.slane %v288_v52, 1 }
 0x12a   : > { %v299_v55 = vadd.f32 %v298_v53, %v297_v51  ;;  %v290_v56 = vadd.f32 %v289_v54, %v288_v52 }
 0x12c   : > { %450 = vpush %v290_v56  ;;  %v300_v57 = vrot.slane %v299_v55, 1 }
 0x12e   : > { %v301_v58 = vadd.f32 %v300_v57, %v299_v55 }
 0x130   : > { %452 = vpush %v301_v58 }
 0x15d   : > { %s451_s26 = spop %450 }
 0x15e   : > { %v306_v61 = vstv %s451_s26 }
 0x161   : > { %s453_s28 = spop %452 }
 0x162   : > { %v307_v62 = vstv %s453_s28 }
 0x163   : > { %v308_v63 = vsel %vm305_vm8, %v306_v61, %v307_v62 }
 0x164   : > { %309 = vst [vmem:[%s216_s30] sm:$0x3] %v308_v63 }
 0x165   : > { %607 = shalt.err (!%p604_p9)
}
 0x166   : > { %s608_s18 = scalar_lea.hbm %s881_s25, 32  ;;  %s612_s5 = scalar_lea.hbm %s932_s2, 64 }
 0x167   : > { %p609_p1 = scmp.ne.s32.totalorder %s881_s25, %s608_s18  ;;  %p613_p5 = scmp.lt.u32.totalorder %s881_s25, %s932_s2 }
 0x168   : > { %p614_p13 = scmp.lt.u32.totalorder %s612_s5, %s608_s18  ;;  %p616_p8 = scmp.lt.u32.totalorder %s608_s18, %s881_s25 }
 0x169   : > { %p610_p6 = pnand %p609_p1, %p946_p0 }
 0x16a   : > { %p615_p3 = por %p614_p13, %p613_p5 }
 0x16b   : > { %p611_p2 = pneg %p610_p6 }
 0x16c   : > { %p617_p11 = por %p616_p8, %p615_p3 }
 0x16e   : > { %p618_p4 = pnand %p617_p11, %p611_p2 }
 0x170   : > { %621 = shalt.err (!%p618_p4)
}
 0x171   : > { %458 = dma.vmem_to_hbm [thread:$0]  (%p946_p0), %s883_s27, 32, %s881_s25, %s311_s12  }
 0x172 PF: > { %s336_s21 = sand.u32 1, %s660_s9   ;;  %p947_p7 = scmp.ne.s32.totalorder %s938_s24, 0 }
 0x173   : > { %p948_p10 = scmp.ge.s32.totalorder %s680_s14, 2  ;;  %s337_s26 = scalar_lea.sflag [#allocation6], %s336_s21 }
 0x175   : > { %p468_p12 = pnand %p948_p10, %p947_p7 }
 0x177   : > { %655 = dma.done.wait (!%p468_p12), %s337_s26, 32  }
 0x178   : > { %657 = vsyncadd (!%p468_p12), %s337_s26, 4294967264  ;;  %s21_s14 = sadd.s32 1, %s680_s14   ;;  %s949_s9 = smov %s664_s10 }
 0x179   : > { %p18_p9 = scmp.ge.s32.totalorder %s21_s14, 4   ;;  %s950_s10 = smov %s668_s11 }
 0x17a   : > { %s951_s11 = smov %s759_s23  ;;  %s952_s12 = smov %s676_s13 }
 0x17b   : > { %s953_s13 = smov %s955_s17  ;;  %20 = sbr.rel (!%p18_p9) target bundleno = 8 (0x8), region = 97 }
 0x182   :  { %342 = vsyncpa [#allocation5], 1 }
 0x183   :  { %344 = vsyncpa [#allocation5 + $0x1], 1 }
 0x184   :  { %345 = vsyncpa [#allocation8], 1 }
 0x185   :  { %347 = vsyncpa [#allocation8 + $0x1], 1 }
 0x186   :  { %348 = vsyncpa [#allocation6], 1 }
 0x187   :  { %350 = vsyncpa [#allocation6 + $0x1], 1 }

</bundles_post_ra>
